<compile_context>
chip_gen: v7x
topology: tpu7x:2x2x1
jax: 0.10.0
libtpu: 0.0.40
codegen_flags: <defaults>
</compile_context>

<pallas_src>
import jax
import jax.numpy as jnp
from jax.experimental import pallas as pl
from jax.experimental.pallas import tpu as pltpu

LANES = 128
EPS = 1e-6


def _round_up(x, m):
    return ((x + m - 1) // m) * m


def _choose_tiling(rows, max_tile_rows=512):
    """Pick (r_tile, num_tiles): r_tile a multiple of 8 and <= ~max_tile_rows,
    num_tiles even (>= 2) whenever there is more than one vreg-row of work so
    the 'parallel' grid axis can shard across v7x's two TensorCores."""
    rows8 = _round_up(max(rows, 1), 8)
    if rows8 <= 8:
        return 8, 1
    num_tiles = max(2, -(-rows8 // max_tile_rows))
    if num_tiles % 2:
        num_tiles += 1
    r_tile = _round_up(-(-rows8 // num_tiles), 8)
    return r_tile, num_tiles


def make_nps_kernel(n_colors):
    """Builds the kernel; the (small) palette size is baked in and unrolled."""

    def nps_kernel(patch_ref, colors_ref, out_ref):
        # patch_ref:  (3, r_tile, 128) f32 VMEM  -- current pixel tile (zero padded)
        # colors_ref: (3 * n_colors,)  f32 SMEM  -- flattened printability palette
        # out_ref:    (1, 128)         f32 VMEM  -- lane-dense per-lane partial sums
        p0 = patch_ref[0]
        p1 = patch_ref[1]
        p2 = patch_ref[2]

        # |p|^2 once per tile; per color only -2 p.c' + |c'|^2 remains.
        p_sq = p0 * p0 + p1 * p1 + p2 * p2

        def color_term(n):
            # c' = c - eps folds the +1e-6 of (p - c + 1e-6) into the scalars.
            c0 = colors_ref[3 * n + 0] - EPS
            c1 = colors_ref[3 * n + 1] - EPS
            c2 = colors_ref[3 * n + 2] - EPS
            a0 = -2.0 * c0                           # scalar unit
            a1 = -2.0 * c1
            a2 = -2.0 * c2
            b = c0 * c0 + c1 * c1 + c2 * c2          # scalar unit
            # 3 mul + 3 add per element on the VPU (plus 1 min outside).
            return p0 * a0 + p1 * a1 + (p2 * a2 + b)

        # Running minimum over the (few) printable colors, statically unrolled.
        m = color_term(0)
        for n in range(1, n_colors):
            m = jnp.minimum(m, color_term(n))

        # Add |p|^2 after the min; clamp against cancellation; single sqrt per
        # element (EUP slot, off the binding VALU path).
        min_sq = jnp.maximum(m + p_sq, 0.0)
        dist = jnp.sqrt(min_sq + EPS)                # (r_tile, 128)

        # Per-lane partial sums -> lane-dense (1, 128) unmasked store.
        out_ref[...] = jnp.sum(dist, axis=0, keepdims=True)

    return nps_kernel


def nps_loss(adv_patch, print_colors, *, max_tile_rows=512):
    """adv_patch: (3, H, W) f32; print_colors: (N, 3) f32 -> scalar f32 NPS."""
    c, h, w = adv_patch.shape
    assert c == 3
    n_colors = print_colors.shape[0]
    p_real = h * w
    # NOTE: PyTorch normalizes by torch.numel(adv_patch) = 3*H*W (not H*W);
    # kept intentionally to reproduce the module's loss scale.
    numel = c * h * w

    rows = -(-p_real // LANES)                       # ceil(P / 128)
    r_tile, num_tiles = _choose_tiling(rows, max_tile_rows)
    rows_pad = num_tiles * r_tile
    p_pad = rows_pad * LANES
    pad_count = p_pad - p_real

    patch = adv_patch.reshape(c, p_real).astype(jnp.float32)
    patch = jnp.pad(patch, ((0, 0), (0, pad_count)))         # zero pad, lane dense
    patch = patch.reshape(c, rows_pad, LANES)
    colors_flat = print_colors.astype(jnp.float32).reshape(-1)   # (3*N,) for SMEM

    partials = pl.pallas_call(
        make_nps_kernel(n_colors),
        out_shape=jax.ShapeDtypeStruct((1, num_tiles * LANES), jnp.float32),
        grid=(num_tiles,),
        in_specs=[
            pl.BlockSpec((c, r_tile, LANES), lambda i: (0, i, 0)),    # pixel tile
            pl.BlockSpec(memory_space=pltpu.MemorySpace.SMEM),        # palette
        ],
        out_specs=pl.BlockSpec((1, LANES), lambda i: (0, i)),         # lane-dense
        compiler_params=pltpu.CompilerParams(
            dimension_semantics=("parallel",),       # independent tiles; v7x 2-TC
            vmem_limit_bytes=32 * 1024 * 1024,
        ),
    )(patch, colors_flat)

    total = jnp.sum(partials)

    if pad_count:
        # Padded pixels are exactly zero, so their contribution is the constant
        # pad_count * sqrt(min_n |c_n - eps|^2 + eps); subtract it instead of
        # masking per element inside the kernel.
        c_shift = print_colors.astype(jnp.float32) - EPS
        pad_dist = jnp.sqrt(jnp.min(jnp.sum(c_shift * c_shift, axis=1)) + EPS)
        total = total - pad_count * pad_dist

    return total * (1.0 / numel)


if __name__ == "__main__":
    key = jax.random.PRNGKey(0)
    side = 16
    n_colors = 12

    # Adversarial patch in [0, 1], shape (3, side, side) as in the PyTorch module.
    adv_patch = jax.random.uniform(key, (3, side, side), dtype=jnp.float32)

    # Deterministic synthetic printability triplets (stand-in for the
    # printability_file the original module parses on the host and tiles
    # spatially -- only the (N, 3) color values matter for the forward pass).
    vals = jnp.linspace(0.05, 0.95, n_colors, dtype=jnp.float32)
    print_colors = jnp.stack(
        [vals, jnp.flip(vals), vals * 0.5 + 0.25], axis=1
    )  # (N, 3)

    nps = jax.block_until_ready(nps_loss(adv_patch, print_colors))

    # Pure-JAX reference reproducing the PyTorch forward exactly.
    pa = print_colors[:, :, None, None] * jnp.ones((1, 1, side, side), jnp.float32)
    cd = (adv_patch[None] - pa + 1e-6) ** 2          # (N, 3, S, S)
    cd = jnp.sqrt(jnp.sum(cd, axis=1) + 1e-6)        # (N, S, S)
    ref = jnp.sum(jnp.min(cd, axis=0)) / adv_patch.size

    assert abs(float(nps) - float(ref)) < 1e-5, (float(nps), float(ref))
    print("KERNEL_OK")
</pallas_src>

<mosaic_0001>
module attributes {stable_mosaic.version = 11 : i64} {
  func.func @nps_kernel(%arg0: i32, %arg1: memref<3x8x128xf32, #tpu.memory_space<vmem>>, %arg2: memref<36xf32, #tpu.memory_space<smem>>, %arg3: memref<1x128xf32, #tpu.memory_space<vmem>>) attributes {dimension_semantics = [#tpu.dimension_semantics<parallel>], iteration_bounds = array<i64: 1>, scalar_prefetch = 0 : i64, scratch_operands = 0 : i64, tpu.core_type = #tpu.core_type<tc>, window_params = [{transform_indices = @transform_0, window_bounds = array<i64: 3, 8, 128>}, {transform_indices = @transform_1, window_bounds = array<i64: 36>}, {transform_indices = @transform_2, window_bounds = array<i64: 1, 128>}]} {
    %c0 = arith.constant 0 : index
    %c0_0 = arith.constant 0 : index
    %c0_1 = arith.constant 0 : index
    %0 = vector.load %arg1[%c0, %c0_0, %c0_1] : memref<3x8x128xf32, #tpu.memory_space<vmem>>, vector<1x8x128xf32>
    %1 = vector.shape_cast %0 : vector<1x8x128xf32> to vector<8x128xf32>
    %c1 = arith.constant 1 : index
    %c0_2 = arith.constant 0 : index
    %c0_3 = arith.constant 0 : index
    %2 = vector.load %arg1[%c1, %c0_2, %c0_3] : memref<3x8x128xf32, #tpu.memory_space<vmem>>, vector<1x8x128xf32>
    %3 = vector.shape_cast %2 : vector<1x8x128xf32> to vector<8x128xf32>
    %c2 = arith.constant 2 : index
    %c0_4 = arith.constant 0 : index
    %c0_5 = arith.constant 0 : index
    %4 = vector.load %arg1[%c2, %c0_4, %c0_5] : memref<3x8x128xf32, #tpu.memory_space<vmem>>, vector<1x8x128xf32>
    %5 = vector.shape_cast %4 : vector<1x8x128xf32> to vector<8x128xf32>
    %6 = arith.mulf %1, %1 : vector<8x128xf32>
    %7 = arith.mulf %3, %3 : vector<8x128xf32>
    %8 = arith.addf %6, %7 : vector<8x128xf32>
    %9 = arith.mulf %5, %5 : vector<8x128xf32>
    %10 = arith.addf %8, %9 : vector<8x128xf32>
    %c0_6 = arith.constant 0 : index
    %11 = memref.load %arg2[%c0_6] : memref<36xf32, #tpu.memory_space<smem>>
    %cst = arith.constant 9.99999997E-7 : f32
    %12 = arith.subf %11, %cst : f32
    %c1_7 = arith.constant 1 : index
    %13 = memref.load %arg2[%c1_7] : memref<36xf32, #tpu.memory_space<smem>>
    %cst_8 = arith.constant 9.99999997E-7 : f32
    %14 = arith.subf %13, %cst_8 : f32
    %c2_9 = arith.constant 2 : index
    %15 = memref.load %arg2[%c2_9] : memref<36xf32, #tpu.memory_space<smem>>
    %cst_10 = arith.constant 9.99999997E-7 : f32
    %16 = arith.subf %15, %cst_10 : f32
    %cst_11 = arith.constant -2.000000e+00 : f32
    %17 = arith.mulf %cst_11, %12 : f32
    %cst_12 = arith.constant -2.000000e+00 : f32
    %18 = arith.mulf %cst_12, %14 : f32
    %cst_13 = arith.constant -2.000000e+00 : f32
    %19 = arith.mulf %cst_13, %16 : f32
    %20 = arith.mulf %12, %12 : f32
    %21 = arith.mulf %14, %14 : f32
    %22 = arith.addf %20, %21 : f32
    %23 = arith.mulf %16, %16 : f32
    %24 = arith.addf %22, %23 : f32
    %25 = vector.broadcast %17 : f32 to vector<8x128xf32>
    %26 = arith.mulf %1, %25 : vector<8x128xf32>
    %27 = vector.broadcast %18 : f32 to vector<8x128xf32>
    %28 = arith.mulf %3, %27 : vector<8x128xf32>
    %29 = arith.addf %26, %28 : vector<8x128xf32>
    %30 = vector.broadcast %19 : f32 to vector<8x128xf32>
    %31 = arith.mulf %5, %30 : vector<8x128xf32>
    %32 = vector.broadcast %24 : f32 to vector<8x128xf32>
    %33 = arith.addf %31, %32 : vector<8x128xf32>
    %34 = arith.addf %29, %33 : vector<8x128xf32>
    %c3 = arith.constant 3 : index
    %35 = memref.load %arg2[%c3] : memref<36xf32, #tpu.memory_space<smem>>
    %cst_14 = arith.constant 9.99999997E-7 : f32
    %36 = arith.subf %35, %cst_14 : f32
    %c4 = arith.constant 4 : index
    %37 = memref.load %arg2[%c4] : memref<36xf32, #tpu.memory_space<smem>>
    %cst_15 = arith.constant 9.99999997E-7 : f32
    %38 = arith.subf %37, %cst_15 : f32
    %c5 = arith.constant 5 : index
    %39 = memref.load %arg2[%c5] : memref<36xf32, #tpu.memory_space<smem>>
    %cst_16 = arith.constant 9.99999997E-7 : f32
    %40 = arith.subf %39, %cst_16 : f32
    %cst_17 = arith.constant -2.000000e+00 : f32
    %41 = arith.mulf %cst_17, %36 : f32
    %cst_18 = arith.constant -2.000000e+00 : f32
    %42 = arith.mulf %cst_18, %38 : f32
    %cst_19 = arith.constant -2.000000e+00 : f32
    %43 = arith.mulf %cst_19, %40 : f32
    %44 = arith.mulf %36, %36 : f32
    %45 = arith.mulf %38, %38 : f32
    %46 = arith.addf %44, %45 : f32
    %47 = arith.mulf %40, %40 : f32
    %48 = arith.addf %46, %47 : f32
    %49 = vector.broadcast %41 : f32 to vector<8x128xf32>
    %50 = arith.mulf %1, %49 : vector<8x128xf32>
    %51 = vector.broadcast %42 : f32 to vector<8x128xf32>
    %52 = arith.mulf %3, %51 : vector<8x128xf32>
    %53 = arith.addf %50, %52 : vector<8x128xf32>
    %54 = vector.broadcast %43 : f32 to vector<8x128xf32>
    %55 = arith.mulf %5, %54 : vector<8x128xf32>
    %56 = vector.broadcast %48 : f32 to vector<8x128xf32>
    %57 = arith.addf %55, %56 : vector<8x128xf32>
    %58 = arith.addf %53, %57 : vector<8x128xf32>
    %59 = arith.minimumf %34, %58 : vector<8x128xf32>
    %c6 = arith.constant 6 : index
    %60 = memref.load %arg2[%c6] : memref<36xf32, #tpu.memory_space<smem>>
    %cst_20 = arith.constant 9.99999997E-7 : f32
    %61 = arith.subf %60, %cst_20 : f32
    %c7 = arith.constant 7 : index
    %62 = memref.load %arg2[%c7] : memref<36xf32, #tpu.memory_space<smem>>
    %cst_21 = arith.constant 9.99999997E-7 : f32
    %63 = arith.subf %62, %cst_21 : f32
    %c8 = arith.constant 8 : index
    %64 = memref.load %arg2[%c8] : memref<36xf32, #tpu.memory_space<smem>>
    %cst_22 = arith.constant 9.99999997E-7 : f32
    %65 = arith.subf %64, %cst_22 : f32
    %cst_23 = arith.constant -2.000000e+00 : f32
    %66 = arith.mulf %cst_23, %61 : f32
    %cst_24 = arith.constant -2.000000e+00 : f32
    %67 = arith.mulf %cst_24, %63 : f32
    %cst_25 = arith.constant -2.000000e+00 : f32
    %68 = arith.mulf %cst_25, %65 : f32
    %69 = arith.mulf %61, %61 : f32
    %70 = arith.mulf %63, %63 : f32
    %71 = arith.addf %69, %70 : f32
    %72 = arith.mulf %65, %65 : f32
    %73 = arith.addf %71, %72 : f32
    %74 = vector.broadcast %66 : f32 to vector<8x128xf32>
    %75 = arith.mulf %1, %74 : vector<8x128xf32>
    %76 = vector.broadcast %67 : f32 to vector<8x128xf32>
    %77 = arith.mulf %3, %76 : vector<8x128xf32>
    %78 = arith.addf %75, %77 : vector<8x128xf32>
    %79 = vector.broadcast %68 : f32 to vector<8x128xf32>
    %80 = arith.mulf %5, %79 : vector<8x128xf32>
    %81 = vector.broadcast %73 : f32 to vector<8x128xf32>
    %82 = arith.addf %80, %81 : vector<8x128xf32>
    %83 = arith.addf %78, %82 : vector<8x128xf32>
    %84 = arith.minimumf %59, %83 : vector<8x128xf32>
    %c9 = arith.constant 9 : index
    %85 = memref.load %arg2[%c9] : memref<36xf32, #tpu.memory_space<smem>>
    %cst_26 = arith.constant 9.99999997E-7 : f32
    %86 = arith.subf %85, %cst_26 : f32
    %c10 = arith.constant 10 : index
    %87 = memref.load %arg2[%c10] : memref<36xf32, #tpu.memory_space<smem>>
    %cst_27 = arith.constant 9.99999997E-7 : f32
    %88 = arith.subf %87, %cst_27 : f32
    %c11 = arith.constant 11 : index
    %89 = memref.load %arg2[%c11] : memref<36xf32, #tpu.memory_space<smem>>
    %cst_28 = arith.constant 9.99999997E-7 : f32
    %90 = arith.subf %89, %cst_28 : f32
    %cst_29 = arith.constant -2.000000e+00 : f32
    %91 = arith.mulf %cst_29, %86 : f32
    %cst_30 = arith.constant -2.000000e+00 : f32
    %92 = arith.mulf %cst_30, %88 : f32
    %cst_31 = arith.constant -2.000000e+00 : f32
    %93 = arith.mulf %cst_31, %90 : f32
    %94 = arith.mulf %86, %86 : f32
    %95 = arith.mulf %88, %88 : f32
    %96 = arith.addf %94, %95 : f32
    %97 = arith.mulf %90, %90 : f32
    %98 = arith.addf %96, %97 : f32
    %99 = vector.broadcast %91 : f32 to vector<8x128xf32>
    %100 = arith.mulf %1, %99 : vector<8x128xf32>
    %101 = vector.broadcast %92 : f32 to vector<8x128xf32>
    %102 = arith.mulf %3, %101 : vector<8x128xf32>
    %103 = arith.addf %100, %102 : vector<8x128xf32>
    %104 = vector.broadcast %93 : f32 to vector<8x128xf32>
    %105 = arith.mulf %5, %104 : vector<8x128xf32>
    %106 = vector.broadcast %98 : f32 to vector<8x128xf32>
    %107 = arith.addf %105, %106 : vector<8x128xf32>
    %108 = arith.addf %103, %107 : vector<8x128xf32>
    %109 = arith.minimumf %84, %108 : vector<8x128xf32>
    %c12 = arith.constant 12 : index
    %110 = memref.load %arg2[%c12] : memref<36xf32, #tpu.memory_space<smem>>
    %cst_32 = arith.constant 9.99999997E-7 : f32
    %111 = arith.subf %110, %cst_32 : f32
    %c13 = arith.constant 13 : index
    %112 = memref.load %arg2[%c13] : memref<36xf32, #tpu.memory_space<smem>>
    %cst_33 = arith.constant 9.99999997E-7 : f32
    %113 = arith.subf %112, %cst_33 : f32
    %c14 = arith.constant 14 : index
    %114 = memref.load %arg2[%c14] : memref<36xf32, #tpu.memory_space<smem>>
    %cst_34 = arith.constant 9.99999997E-7 : f32
    %115 = arith.subf %114, %cst_34 : f32
    %cst_35 = arith.constant -2.000000e+00 : f32
    %116 = arith.mulf %cst_35, %111 : f32
    %cst_36 = arith.constant -2.000000e+00 : f32
    %117 = arith.mulf %cst_36, %113 : f32
    %cst_37 = arith.constant -2.000000e+00 : f32
    %118 = arith.mulf %cst_37, %115 : f32
    %119 = arith.mulf %111, %111 : f32
    %120 = arith.mulf %113, %113 : f32
    %121 = arith.addf %119, %120 : f32
    %122 = arith.mulf %115, %115 : f32
    %123 = arith.addf %121, %122 : f32
    %124 = vector.broadcast %116 : f32 to vector<8x128xf32>
    %125 = arith.mulf %1, %124 : vector<8x128xf32>
    %126 = vector.broadcast %117 : f32 to vector<8x128xf32>
    %127 = arith.mulf %3, %126 : vector<8x128xf32>
    %128 = arith.addf %125, %127 : vector<8x128xf32>
    %129 = vector.broadcast %118 : f32 to vector<8x128xf32>
    %130 = arith.mulf %5, %129 : vector<8x128xf32>
    %131 = vector.broadcast %123 : f32 to vector<8x128xf32>
    %132 = arith.addf %130, %131 : vector<8x128xf32>
    %133 = arith.addf %128, %132 : vector<8x128xf32>
    %134 = arith.minimumf %109, %133 : vector<8x128xf32>
    %c15 = arith.constant 15 : index
    %135 = memref.load %arg2[%c15] : memref<36xf32, #tpu.memory_space<smem>>
    %cst_38 = arith.constant 9.99999997E-7 : f32
    %136 = arith.subf %135, %cst_38 : f32
    %c16 = arith.constant 16 : index
    %137 = memref.load %arg2[%c16] : memref<36xf32, #tpu.memory_space<smem>>
    %cst_39 = arith.constant 9.99999997E-7 : f32
    %138 = arith.subf %137, %cst_39 : f32
    %c17 = arith.constant 17 : index
    %139 = memref.load %arg2[%c17] : memref<36xf32, #tpu.memory_space<smem>>
    %cst_40 = arith.constant 9.99999997E-7 : f32
    %140 = arith.subf %139, %cst_40 : f32
    %cst_41 = arith.constant -2.000000e+00 : f32
    %141 = arith.mulf %cst_41, %136 : f32
    %cst_42 = arith.constant -2.000000e+00 : f32
    %142 = arith.mulf %cst_42, %138 : f32
    %cst_43 = arith.constant -2.000000e+00 : f32
    %143 = arith.mulf %cst_43, %140 : f32
    %144 = arith.mulf %136, %136 : f32
    %145 = arith.mulf %138, %138 : f32
    %146 = arith.addf %144, %145 : f32
    %147 = arith.mulf %140, %140 : f32
    %148 = arith.addf %146, %147 : f32
    %149 = vector.broadcast %141 : f32 to vector<8x128xf32>
    %150 = arith.mulf %1, %149 : vector<8x128xf32>
    %151 = vector.broadcast %142 : f32 to vector<8x128xf32>
    %152 = arith.mulf %3, %151 : vector<8x128xf32>
    %153 = arith.addf %150, %152 : vector<8x128xf32>
    %154 = vector.broadcast %143 : f32 to vector<8x128xf32>
    %155 = arith.mulf %5, %154 : vector<8x128xf32>
    %156 = vector.broadcast %148 : f32 to vector<8x128xf32>
    %157 = arith.addf %155, %156 : vector<8x128xf32>
    %158 = arith.addf %153, %157 : vector<8x128xf32>
    %159 = arith.minimumf %134, %158 : vector<8x128xf32>
    %c18 = arith.constant 18 : index
    %160 = memref.load %arg2[%c18] : memref<36xf32, #tpu.memory_space<smem>>
    %cst_44 = arith.constant 9.99999997E-7 : f32
    %161 = arith.subf %160, %cst_44 : f32
    %c19 = arith.constant 19 : index
    %162 = memref.load %arg2[%c19] : memref<36xf32, #tpu.memory_space<smem>>
    %cst_45 = arith.constant 9.99999997E-7 : f32
    %163 = arith.subf %162, %cst_45 : f32
    %c20 = arith.constant 20 : index
    %164 = memref.load %arg2[%c20] : memref<36xf32, #tpu.memory_space<smem>>
    %cst_46 = arith.constant 9.99999997E-7 : f32
    %165 = arith.subf %164, %cst_46 : f32
    %cst_47 = arith.constant -2.000000e+00 : f32
    %166 = arith.mulf %cst_47, %161 : f32
    %cst_48 = arith.constant -2.000000e+00 : f32
    %167 = arith.mulf %cst_48, %163 : f32
    %cst_49 = arith.constant -2.000000e+00 : f32
    %168 = arith.mulf %cst_49, %165 : f32
    %169 = arith.mulf %161, %161 : f32
    %170 = arith.mulf %163, %163 : f32
    %171 = arith.addf %169, %170 : f32
    %172 = arith.mulf %165, %165 : f32
    %173 = arith.addf %171, %172 : f32
    %174 = vector.broadcast %166 : f32 to vector<8x128xf32>
    %175 = arith.mulf %1, %174 : vector<8x128xf32>
    %176 = vector.broadcast %167 : f32 to vector<8x128xf32>
    %177 = arith.mulf %3, %176 : vector<8x128xf32>
    %178 = arith.addf %175, %177 : vector<8x128xf32>
    %179 = vector.broadcast %168 : f32 to vector<8x128xf32>
    %180 = arith.mulf %5, %179 : vector<8x128xf32>
    %181 = vector.broadcast %173 : f32 to vector<8x128xf32>
    %182 = arith.addf %180, %181 : vector<8x128xf32>
    %183 = arith.addf %178, %182 : vector<8x128xf32>
    %184 = arith.minimumf %159, %183 : vector<8x128xf32>
    %c21 = arith.constant 21 : index
    %185 = memref.load %arg2[%c21] : memref<36xf32, #tpu.memory_space<smem>>
    %cst_50 = arith.constant 9.99999997E-7 : f32
    %186 = arith.subf %185, %cst_50 : f32
    %c22 = arith.constant 22 : index
    %187 = memref.load %arg2[%c22] : memref<36xf32, #tpu.memory_space<smem>>
    %cst_51 = arith.constant 9.99999997E-7 : f32
    %188 = arith.subf %187, %cst_51 : f32
    %c23 = arith.constant 23 : index
    %189 = memref.load %arg2[%c23] : memref<36xf32, #tpu.memory_space<smem>>
    %cst_52 = arith.constant 9.99999997E-7 : f32
    %190 = arith.subf %189, %cst_52 : f32
    %cst_53 = arith.constant -2.000000e+00 : f32
    %191 = arith.mulf %cst_53, %186 : f32
    %cst_54 = arith.constant -2.000000e+00 : f32
    %192 = arith.mulf %cst_54, %188 : f32
    %cst_55 = arith.constant -2.000000e+00 : f32
    %193 = arith.mulf %cst_55, %190 : f32
    %194 = arith.mulf %186, %186 : f32
    %195 = arith.mulf %188, %188 : f32
    %196 = arith.addf %194, %195 : f32
    %197 = arith.mulf %190, %190 : f32
    %198 = arith.addf %196, %197 : f32
    %199 = vector.broadcast %191 : f32 to vector<8x128xf32>
    %200 = arith.mulf %1, %199 : vector<8x128xf32>
    %201 = vector.broadcast %192 : f32 to vector<8x128xf32>
    %202 = arith.mulf %3, %201 : vector<8x128xf32>
    %203 = arith.addf %200, %202 : vector<8x128xf32>
    %204 = vector.broadcast %193 : f32 to vector<8x128xf32>
    %205 = arith.mulf %5, %204 : vector<8x128xf32>
    %206 = vector.broadcast %198 : f32 to vector<8x128xf32>
    %207 = arith.addf %205, %206 : vector<8x128xf32>
    %208 = arith.addf %203, %207 : vector<8x128xf32>
    %209 = arith.minimumf %184, %208 : vector<8x128xf32>
    %c24 = arith.constant 24 : index
    %210 = memref.load %arg2[%c24] : memref<36xf32, #tpu.memory_space<smem>>
    %cst_56 = arith.constant 9.99999997E-7 : f32
    %211 = arith.subf %210, %cst_56 : f32
    %c25 = arith.constant 25 : index
    %212 = memref.load %arg2[%c25] : memref<36xf32, #tpu.memory_space<smem>>
    %cst_57 = arith.constant 9.99999997E-7 : f32
    %213 = arith.subf %212, %cst_57 : f32
    %c26 = arith.constant 26 : index
    %214 = memref.load %arg2[%c26] : memref<36xf32, #tpu.memory_space<smem>>
    %cst_58 = arith.constant 9.99999997E-7 : f32
    %215 = arith.subf %214, %cst_58 : f32
    %cst_59 = arith.constant -2.000000e+00 : f32
    %216 = arith.mulf %cst_59, %211 : f32
    %cst_60 = arith.constant -2.000000e+00 : f32
    %217 = arith.mulf %cst_60, %213 : f32
    %cst_61 = arith.constant -2.000000e+00 : f32
    %218 = arith.mulf %cst_61, %215 : f32
    %219 = arith.mulf %211, %211 : f32
    %220 = arith.mulf %213, %213 : f32
    %221 = arith.addf %219, %220 : f32
    %222 = arith.mulf %215, %215 : f32
    %223 = arith.addf %221, %222 : f32
    %224 = vector.broadcast %216 : f32 to vector<8x128xf32>
    %225 = arith.mulf %1, %224 : vector<8x128xf32>
    %226 = vector.broadcast %217 : f32 to vector<8x128xf32>
    %227 = arith.mulf %3, %226 : vector<8x128xf32>
    %228 = arith.addf %225, %227 : vector<8x128xf32>
    %229 = vector.broadcast %218 : f32 to vector<8x128xf32>
    %230 = arith.mulf %5, %229 : vector<8x128xf32>
    %231 = vector.broadcast %223 : f32 to vector<8x128xf32>
    %232 = arith.addf %230, %231 : vector<8x128xf32>
    %233 = arith.addf %228, %232 : vector<8x128xf32>
    %234 = arith.minimumf %209, %233 : vector<8x128xf32>
    %c27 = arith.constant 27 : index
    %235 = memref.load %arg2[%c27] : memref<36xf32, #tpu.memory_space<smem>>
    %cst_62 = arith.constant 9.99999997E-7 : f32
    %236 = arith.subf %235, %cst_62 : f32
    %c28 = arith.constant 28 : index
    %237 = memref.load %arg2[%c28] : memref<36xf32, #tpu.memory_space<smem>>
    %cst_63 = arith.constant 9.99999997E-7 : f32
    %238 = arith.subf %237, %cst_63 : f32
    %c29 = arith.constant 29 : index
    %239 = memref.load %arg2[%c29] : memref<36xf32, #tpu.memory_space<smem>>
    %cst_64 = arith.constant 9.99999997E-7 : f32
    %240 = arith.subf %239, %cst_64 : f32
    %cst_65 = arith.constant -2.000000e+00 : f32
    %241 = arith.mulf %cst_65, %236 : f32
    %cst_66 = arith.constant -2.000000e+00 : f32
    %242 = arith.mulf %cst_66, %238 : f32
    %cst_67 = arith.constant -2.000000e+00 : f32
    %243 = arith.mulf %cst_67, %240 : f32
    %244 = arith.mulf %236, %236 : f32
    %245 = arith.mulf %238, %238 : f32
    %246 = arith.addf %244, %245 : f32
    %247 = arith.mulf %240, %240 : f32
    %248 = arith.addf %246, %247 : f32
    %249 = vector.broadcast %241 : f32 to vector<8x128xf32>
    %250 = arith.mulf %1, %249 : vector<8x128xf32>
    %251 = vector.broadcast %242 : f32 to vector<8x128xf32>
    %252 = arith.mulf %3, %251 : vector<8x128xf32>
    %253 = arith.addf %250, %252 : vector<8x128xf32>
    %254 = vector.broadcast %243 : f32 to vector<8x128xf32>
    %255 = arith.mulf %5, %254 : vector<8x128xf32>
    %256 = vector.broadcast %248 : f32 to vector<8x128xf32>
    %257 = arith.addf %255, %256 : vector<8x128xf32>
    %258 = arith.addf %253, %257 : vector<8x128xf32>
    %259 = arith.minimumf %234, %258 : vector<8x128xf32>
    %c30 = arith.constant 30 : index
    %260 = memref.load %arg2[%c30] : memref<36xf32, #tpu.memory_space<smem>>
    %cst_68 = arith.constant 9.99999997E-7 : f32
    %261 = arith.subf %260, %cst_68 : f32
    %c31 = arith.constant 31 : index
    %262 = memref.load %arg2[%c31] : memref<36xf32, #tpu.memory_space<smem>>
    %cst_69 = arith.constant 9.99999997E-7 : f32
    %263 = arith.subf %262, %cst_69 : f32
    %c32 = arith.constant 32 : index
    %264 = memref.load %arg2[%c32] : memref<36xf32, #tpu.memory_space<smem>>
    %cst_70 = arith.constant 9.99999997E-7 : f32
    %265 = arith.subf %264, %cst_70 : f32
    %cst_71 = arith.constant -2.000000e+00 : f32
    %266 = arith.mulf %cst_71, %261 : f32
    %cst_72 = arith.constant -2.000000e+00 : f32
    %267 = arith.mulf %cst_72, %263 : f32
    %cst_73 = arith.constant -2.000000e+00 : f32
    %268 = arith.mulf %cst_73, %265 : f32
    %269 = arith.mulf %261, %261 : f32
    %270 = arith.mulf %263, %263 : f32
    %271 = arith.addf %269, %270 : f32
    %272 = arith.mulf %265, %265 : f32
    %273 = arith.addf %271, %272 : f32
    %274 = vector.broadcast %266 : f32 to vector<8x128xf32>
    %275 = arith.mulf %1, %274 : vector<8x128xf32>
    %276 = vector.broadcast %267 : f32 to vector<8x128xf32>
    %277 = arith.mulf %3, %276 : vector<8x128xf32>
    %278 = arith.addf %275, %277 : vector<8x128xf32>
    %279 = vector.broadcast %268 : f32 to vector<8x128xf32>
    %280 = arith.mulf %5, %279 : vector<8x128xf32>
    %281 = vector.broadcast %273 : f32 to vector<8x128xf32>
    %282 = arith.addf %280, %281 : vector<8x128xf32>
    %283 = arith.addf %278, %282 : vector<8x128xf32>
    %284 = arith.minimumf %259, %283 : vector<8x128xf32>
    %c33 = arith.constant 33 : index
    %285 = memref.load %arg2[%c33] : memref<36xf32, #tpu.memory_space<smem>>
    %cst_74 = arith.constant 9.99999997E-7 : f32
    %286 = arith.subf %285, %cst_74 : f32
    %c34 = arith.constant 34 : index
    %287 = memref.load %arg2[%c34] : memref<36xf32, #tpu.memory_space<smem>>
    %cst_75 = arith.constant 9.99999997E-7 : f32
    %288 = arith.subf %287, %cst_75 : f32
    %c35 = arith.constant 35 : index
    %289 = memref.load %arg2[%c35] : memref<36xf32, #tpu.memory_space<smem>>
    %cst_76 = arith.constant 9.99999997E-7 : f32
    %290 = arith.subf %289, %cst_76 : f32
    %cst_77 = arith.constant -2.000000e+00 : f32
    %291 = arith.mulf %cst_77, %286 : f32
    %cst_78 = arith.constant -2.000000e+00 : f32
    %292 = arith.mulf %cst_78, %288 : f32
    %cst_79 = arith.constant -2.000000e+00 : f32
    %293 = arith.mulf %cst_79, %290 : f32
    %294 = arith.mulf %286, %286 : f32
    %295 = arith.mulf %288, %288 : f32
    %296 = arith.addf %294, %295 : f32
    %297 = arith.mulf %290, %290 : f32
    %298 = arith.addf %296, %297 : f32
    %299 = vector.broadcast %291 : f32 to vector<8x128xf32>
    %300 = arith.mulf %1, %299 : vector<8x128xf32>
    %301 = vector.broadcast %292 : f32 to vector<8x128xf32>
    %302 = arith.mulf %3, %301 : vector<8x128xf32>
    %303 = arith.addf %300, %302 : vector<8x128xf32>
    %304 = vector.broadcast %293 : f32 to vector<8x128xf32>
    %305 = arith.mulf %5, %304 : vector<8x128xf32>
    %306 = vector.broadcast %298 : f32 to vector<8x128xf32>
    %307 = arith.addf %305, %306 : vector<8x128xf32>
    %308 = arith.addf %303, %307 : vector<8x128xf32>
    %309 = arith.minimumf %284, %308 : vector<8x128xf32>
    %310 = arith.addf %309, %10 : vector<8x128xf32>
    %cst_80 = arith.constant 0.000000e+00 : f32
    %311 = vector.broadcast %cst_80 : f32 to vector<8x128xf32>
    %312 = arith.maximumf %310, %311 : vector<8x128xf32>
    %cst_81 = arith.constant 9.99999997E-7 : f32
    %313 = vector.broadcast %cst_81 : f32 to vector<8x128xf32>
    %314 = arith.addf %312, %313 : vector<8x128xf32>
    %315 = math.sqrt %314 : vector<8x128xf32>
    %cst_82 = arith.constant dense<0.000000e+00> : vector<128xf32>
    %316 = vector.multi_reduction <add>, %315, %cst_82 [0] : vector<8x128xf32> to vector<128xf32>
    %317 = vector.shape_cast %316 : vector<128xf32> to vector<1x128xf32>
    %c0_83 = arith.constant 0 : index
    %c0_84 = arith.constant 0 : index
    %318 = vector.load %arg3[%c0_83, %c0_84] : memref<1x128xf32, #tpu.memory_space<vmem>>, vector<1x128xf32>
    tpu.vector_store %arg3[%c0_83, %c0_84], %317 {strides = array<i32>} : memref<1x128xf32, #tpu.memory_space<vmem>>, vector<1x128xf32>,
    return
  }
  func.func @transform_0(%arg0: i32) -> (i32, i32, i32) {
    %c0_i32 = arith.constant 0 : i32
    %c0_i32_0 = arith.constant 0 : i32
    %c0_i32_1 = arith.constant 0 : i32
    return %c0_i32, %arg0, %c0_i32_0 : i32, i32, i32
  }
  func.func @transform_1(%arg0: i32) -> i32 {
    %c0_i32 = arith.constant 0 : i32
    %c0_i32_0 = arith.constant 0 : i32
    return %c0_i32 : i32
  }
  func.func @transform_2(%arg0: i32) -> (i32, i32) {
    %c0_i32 = arith.constant 0 : i32
    %c0_i32_0 = arith.constant 0 : i32
    return %c0_i32, %arg0 : i32, i32
  }
}

</mosaic_0001>

<bundles_post_ra>
// kernel: tpu_custom_call.1
= control target key start
LH: loop header
LB: loop body
LE: loop exit
PB: predicated region body
PF: predicated region fallthrough
CT: control target
= control target key end

     0   :  { %s863_s0 = inlined_call_operand.hbm [shape: f32[3,8,128], index: 0, kind: input, shape index: {}]   ;;  %s864_s1 = inlined_call_operand.vmem [shape: f32[36], index: 1, kind: input, shape index: {}]   ;;  %s865_s2 = inlined_call_operand.hbm [shape: f32[1,128], index: 2, kind: output, shape index: {}]  }
   0x1   :  { %867 = sst [smem:[#allocation11_spill]] %s865_s2 }
   0x2   :  { %7 = vsyncpa [#allocation3], 0 }
   0x3   :  { %8 = vsyncpa [#allocation5], 0 }
   0x4   :  { %9 = vsyncpa [#allocation4], 0  ;;  %s521_s9 = smov [#allocation2]   ;;  %s28_s13 = sshll.u32 %s864_s1, 4  ;;  %s29_s13 = int_to_ptr.vmem [resolvable:$true] %s28_s13 }
   0x5   :  { %s15_s10 = sshll.u32 %s521_s9, 4  ;;  %s459_s16 = scalar_lea.hbm %s863_s0, 384  ;;  %s16_s10 = int_to_ptr.vmem [resolvable:$true] %s15_s10 }
   0x6   :  { %p460_p0 = scmp.ne.s32.totalorder %s863_s0, %s459_s16  ;;  %p463_p1 = scmp.lt.u32.totalorder %s459_s16, %s863_s0 }
   0x8   :  { %p465_p2 = pnand %p463_p1, %p460_p0 }
   0xa   :  { %468 = shalt.err (!%p465_p2)
}
   0xb   :  { %s469_s21 = scalar_lea.vmem %s16_s10, 384  ;;  %p474_p4 = scmp.lt.s32.totalorder %s16_s10, %s16_s10 }
   0xc   :  { %p470_p3 = scmp.ne.s32.totalorder %s16_s10, %s469_s21  ;;  %p475_p5 = scmp.lt.s32.totalorder %s469_s21, %s469_s21 }
   0xe   :  { %p476_p6 = por %p475_p5, %p474_p4 }
  0x10   :  { %p477_p7 = pnand %p476_p6, %p470_p3 }
  0x12   :  { %480 = shalt.err (!%p477_p7)
}
  0x13   :  { %s522_s1 = smov 128   ;;  %s523_s22 = smov 8  }
  0x14   :  { %21 = dma.hbm_to_vmem [thread:$0]  %s863_s0, 384, %s16_s10, [#allocation3], %s522_s1, %s522_s1, %s523_s22  }
  0x15   :  { %s481_s25 = scalar_lea.vmem %s29_s13, 16  ;;  %p486_p9 = scmp.lt.s32.totalorder %s29_s13, %s29_s13 }
  0x16   :  { %p482_p8 = scmp.ne.s32.totalorder %s29_s13, %s481_s25  ;;  %p487_p10 = scmp.lt.s32.totalorder %s481_s25, %s481_s25 }
  0x18   :  { %p488_p11 = por %p487_p10, %p486_p9 }
  0x1a   :  { %p489_p12 = pnand %p488_p11, %p482_p8 }
  0x1c   :  { %492 = shalt.err (!%p489_p12)
}
  0x1d   :  { %s524_s26 = smov [#allocation6]  }
  0x1e   :  { %31 = dma.vmem_to_smem %s29_s13, 16, %s524_s26, [#allocation5]  }
  0x1f   :  { %515 = dma.done.wait [#allocation3], 384  }
  0x20   :  { %516 = vsyncadd [#allocation3], 4294966912 }
  0x21   :  { %517 = dma.done.wait [#allocation5], 16  }
  0x22   :  { %518 = vsyncadd [#allocation5], 4294967280 }
  0x23   :  { %38 = sfence }
  0x24   :  { %s49_s27 = sld [smem:[#allocation6]]  ;;  %s382_s28 = sld [smem:[#allocation6 + $0x1]]  ;;  %v634_v0 = vld [vmem:[#allocation2] sm:$0xff]  ;;  %v641_v2 = vld [vmem:[#allocation2 + $0x8] sm:$0xff]  ;;  %v643_v3 = vld [vmem:[#allocation2 + $0x10] sm:$0xff] }
  0x25   :  { %s384_s29 = sld [smem:[#allocation6 + $0x2]]  ;;  %s386_s30 = sld [smem:[#allocation6 + $0x3]] }
  0x26   :  { %s388_s0 = sld [smem:[#allocation6 + $0x4]]  ;;  %s390_s3 = sld [smem:[#allocation6 + $0x5]] }
  0x27   :  { %s392_s4 = sld [smem:[#allocation6 + $0x6]]  ;;  %s394_s5 = sld [smem:[#allocation6 + $0x7]] }
  0x28   :  { %s396_s6 = sld [smem:[#allocation6 + $0x8]]  ;;  %s398_s7 = sld [smem:[#allocation6 + $0x9]] }
  0x29   :  { %s400_s8 = sld [smem:[#allocation6 + $0xa]]  ;;  %s402_s10 = sld [smem:[#allocation6 + $0xb]] }
  0x2a   :  { %s556_s9 = sadd.f32 -1e-06, %s49_s27  ;;  %s404_s12 = sld [smem:[#allocation6 + $0xc]] }
  0x2b   :  { %s558_s11 = sadd.f32 -1e-06, %s382_s28  ;;  %s406_s26 = sld [smem:[#allocation6 + $0xd]] }
  0x2c   :  { %s560_s13 = sadd.f32 -1e-06, %s384_s29  ;;  %s58_s19 = smul.f32 %s556_s9, %s556_s9 }
  0x2d   :  { %s564_s16 = sadd.f32 -1e-06, %s386_s30  ;;  %s59_s21 = smul.f32 %s558_s11, %s558_s11 }
  0x2e   :  { %s567_s18 = sadd.f32 -1e-06, %s388_s0  ;;  %s61_s22 = smul.f32 %s560_s13, %s560_s13 }
  0x2f   :  { %s571_s20 = sadd.f32 -1e-06, %s390_s3  ;;  %s82_s30 = smul.f32 %s564_s16, %s564_s16 }
  0x30   :  { %s575_s1 = sadd.f32 -1e-06, %s392_s4  ;;  %s83_s3 = smul.f32 %s567_s18, %s567_s18 }
  0x31   :  { %s579_s23 = sadd.f32 -1e-06, %s394_s5  ;;  %s85_s5 = smul.f32 %s571_s20, %s571_s20 }
  0x32   :  { %s60_s24 = sadd.f32 %s59_s21, %s58_s19  ;;  %s408_s17 = sld [smem:[#allocation6 + $0xe]] }
  0x33   :  { %s583_s27 = sadd.f32 -1e-06, %s396_s6  ;;  %s108_s25 = smul.f32 %s579_s23, %s579_s23 }
  0x34   :  { %s585_s28 = sadd.f32 %s61_s22, %s60_s24  ;;  %s412_s21 = sld [smem:[#allocation6 + $0x10]] }
  0x35   :  { %s590_s0 = sadd.f32 -1e-06, %s398_s7 }
  0x36   :  { %s594_s4 = sadd.f32 -1e-06, %s400_s8  ;;  %s107_s8 = smul.f32 %s575_s1, %s575_s1  ;;  %v70_v14 = vstv %s585_s28 }
  0x37   :  { %s598_s6 = sadd.f32 -1e-06, %s402_s10  ;;  %s110_s10 = smul.f32 %s583_s27, %s583_s27 }
  0x38   :  { %s84_s19 = sadd.f32 %s83_s3, %s82_s30  ;;  %s410_s30 = sld [smem:[#allocation6 + $0xf]] }
  0x39   :  { %s602_s24 = sadd.f32 -1e-06, %s404_s12  ;;  %s132_s7 = smul.f32 %s590_s0, %s590_s0 }
  0x3a   :  { %s604_s29 = sadd.f32 %s85_s5, %s84_s19  ;;  %s133_s14 = smul.f32 %s594_s4, %s594_s4 }
  0x3b   :  { %s109_s3 = sadd.f32 %s108_s25, %s107_s8  ;;  %s135_s25 = smul.f32 %s598_s6, %s598_s6 }
  0x3c   :  { %s620_s15 = sadd.f32 -1e-06, %s406_s26  ;;  %s868_s12 = smul.f32 -2.0, %s556_s9  ;;  %v94_v16 = vstv %s604_s29 }
  0x3d   :  { %s615_s5 = sadd.f32 %s110_s10, %s109_s3  ;;  %s154_s3 = smul.f32 -2.0, %s602_s24 }
  0x3e   :  { %s624_s2 = sadd.f32 -1e-06, %s408_s17  ;;  %v63_v1 = vstv %s868_s12  ;;  %s157_s9 = smul.f32 %s602_s24, %s602_s24 }
  0x3f   :  { %s628_s8 = sadd.f32 -1e-06, %s410_s30  ;;  %s869_s30 = smul.f32 -2.0, %s558_s11  ;;  %v64_v9 = vmul.f32 %v63_v1, %v634_v0  ;;  %v119_v27 = vstv %s615_s5  ;;  %v162_v38 = vstv %s154_s3 }
  0x40   :  { %s134_s10 = sadd.f32 %s133_s14, %s132_s7  ;;  %s870_s14 = smul.f32 -2.0, %s560_s13  ;;  %v163_v44 = vmul.f32 %v162_v38, %v634_v0 }
  0x41   :  { %s632_s19 = sadd.f32 -1e-06, %s412_s21  ;;  %v65_v4 = vstv %s869_s30  ;;  %s871_s7 = smul.f32 -2.0, %s564_s16 }
  0x42   :  { %s638_s17 = sadd.f32 %s135_s25, %s134_s10  ;;  %v68_v5 = vstv %s870_s14  ;;  %s872_s21 = smul.f32 -2.0, %s567_s18  ;;  %v66_v10 = vmul.f32 %v65_v4, %v641_v2 }
  0x43   :  { %v87_v6 = vstv %s871_s7  ;;  %s414_s12 = sld [smem:[#allocation6 + $0x11]]  ;;  %s873_s25 = smul.f32 -2.0, %s571_s20  ;;  %v69_v11 = vmul.f32 %v68_v5, %v643_v3 }
  0x44   :  { %v89_v7 = vstv %s872_s21  ;;  %s158_s10 = smul.f32 %s620_s15, %s620_s15  ;;  %s416_s11 = sld [smem:[#allocation6 + $0x12]]  ;;  %v88_v12 = vmul.f32 %v87_v6, %v634_v0  ;;  %v67_v20 = vadd.f32 %v66_v10, %v64_v9  ;;  %v144_v40 = vstv %s638_s17 }
  0x45   :  { %v92_v8 = vstv %s873_s25  ;;  %s160_s13 = smul.f32 %s624_s2, %s624_s2  ;;  %s662_s16 = sld [smem:[#allocation6 + $0x13]]  ;;  %v90_v13 = vmul.f32 %v89_v7, %v641_v2  ;;  %v71_v21 = vadd.f32 %v70_v14, %v69_v11 }
  0x46   :  { %s159_s18 = sadd.f32 %s158_s10, %s157_s9  ;;  %s179_s20 = smul.f32 -2.0, %s628_s8  ;;  %v93_v15 = vmul.f32 %v92_v8, %v643_v3 }
  0x47   :  { %s180_s30 = smul.f32 -2.0, %s632_s19  ;;  %s420_s14 = sld [smem:[#allocation6 + $0x14]]  ;;  %v91_v22 = vadd.f32 %v90_v13, %v88_v12  ;;  %v72_v31 = vadd.f32 %v71_v21, %v67_v20 }
  0x48   :  { %s874_s7 = smul.f32 -2.0, %s575_s1  ;;  %s679_s22 = sadd.f32 %s160_s13, %s159_s18  ;;  %v95_v23 = vadd.f32 %v94_v16, %v93_v15  ;;  %v187_v50 = vstv %s179_s20 }
  0x49   :  { %s875_s21 = smul.f32 -2.0, %s579_s23  ;;  %s683_s9 = sadd.f32 -1e-06, %s414_s12  ;;  %v189_v51 = vstv %s180_s30  ;;  %v188_v57 = vmul.f32 %v187_v50, %v634_v0 }
  0x4a   :  { %v112_v17 = vstv %s874_s7  ;;  %s876_s25 = smul.f32 -2.0, %s583_s27  ;;  %s687_s1 = sadd.f32 -1e-06, %s416_s11  ;;  %v96_v32 = vadd.f32 %v95_v23, %v91_v22  ;;  %v169_v49 = vstv %s679_s22  ;;  %v190_v58 = vmul.f32 %v189_v51, %v641_v2 }
  0x4b   :  { %v114_v18 = vstv %s875_s21  ;;  %s182_s26 = smul.f32 %s628_s8, %s628_s8  ;;  %s689_s23 = sld [smem:[#allocation6 + $0x15]]  ;;  %v113_v24 = vmul.f32 %v112_v17, %v634_v0 }
  0x4c   :  { %v117_v19 = vstv %s876_s25  ;;  %s183_s28 = smul.f32 %s632_s19, %s632_s19  ;;  %v115_v25 = vmul.f32 %v114_v18, %v641_v2  ;;  %s701_s13 = sadd.f32 -1e-06, %s662_s16  ;;  %v97_v42 = vmin.f32 %v72_v31, %v96_v32  ;;  %v191_v5 = vadd.f32 %v190_v58, %v188_v57 }
  0x4d   :  { %v118_v26 = vmul.f32 %v117_v19, %v643_v3  ;;  %s181_s27 = smul.f32 -2.0, %s683_s9  ;;  %s707_s7 = sadd.f32 -1e-06, %s420_s14 }
  0x4e   :  { %s184_s29 = sadd.f32 %s183_s28, %s182_s26  ;;  %s877_s12 = smul.f32 -2.0, %s590_s0  ;;  %v116_v33 = vadd.f32 %v115_v25, %v113_v24 }
  0x4f   :  { %s185_s10 = smul.f32 %s683_s9, %s683_s9  ;;  %v120_v34 = vadd.f32 %v119_v27, %v118_v26  ;;  %s428_s3 = sld [smem:[#allocation6 + $0x18]]  ;;  %v192_v52 = vstv %s181_s27 }
  0x50   :  { %v137_v28 = vstv %s877_s12  ;;  %s878_s11 = smul.f32 -2.0, %s594_s4  ;;  %s757_s19 = sld [smem:[#allocation6 + $0x1c]]  ;;  %v193_v59 = vmul.f32 %v192_v52, %v643_v3 }
  0x51   :  { %s879_s18 = smul.f32 -2.0, %s598_s6  ;;  %s710_s0 = sadd.f32 %s185_s10, %s184_s29  ;;  %v138_v35 = vmul.f32 %v137_v28, %v634_v0  ;;  %v121_v43 = vadd.f32 %v120_v34, %v116_v33 }
  0x52   :  { %v139_v29 = vstv %s878_s11  ;;  %s204_s26 = smul.f32 -2.0, %s687_s1  ;;  %s715_s6 = sld [smem:[#allocation6 + $0x16]] }
  0x53   :  { %v142_v30 = vstv %s879_s18  ;;  %s205_s5 = smul.f32 -2.0, %s701_s13  ;;  %v140_v36 = vmul.f32 %v139_v29, %v641_v2  ;;  %s726_s21 = sadd.f32 -1e-06, %s689_s23  ;;  %v122_v53 = vmin.f32 %v97_v42, %v121_v43  ;;  %v194_v60 = vstv %s710_s0 }
  0x54   :  { %s206_s4 = smul.f32 -2.0, %s707_s7  ;;  %v143_v37 = vmul.f32 %v142_v30, %v643_v3  ;;  %s426_s29 = sld [smem:[#allocation6 + $0x17]]  ;;  %v212_v61 = vstv %s204_s26  ;;  %v195_v6 = vadd.f32 %v194_v60, %v193_v59 }
  0x55   :  { %s880_s16 = smul.f32 -2.0, %s620_s15  ;;  %v141_v46 = vadd.f32 %v140_v36, %v138_v35  ;;  %s430_s23 = sld [smem:[#allocation6 + $0x19]]  ;;  %v214_v62 = vstv %s205_s5  ;;  %v213_v7 = vmul.f32 %v212_v61, %v634_v0  ;;  %v44_v61 = vmul.f32 %v634_v0, %v634_v0 }
  0x56   :  { %s207_s14 = smul.f32 %s687_s1, %s687_s1  ;;  %v145_v47 = vadd.f32 %v144_v40, %v143_v37  ;;  %s432_s10 = sld [smem:[#allocation6 + $0x1a]]  ;;  %v217_v63 = vstv %s206_s4  ;;  %v215_v8 = vmul.f32 %v214_v62, %v641_v2  ;;  %v196_v15 = vadd.f32 %v195_v6, %v191_v5 }
  0x57   :  { %v164_v39 = vstv %s880_s16  ;;  %s881_s25 = smul.f32 -2.0, %s624_s2  ;;  %s753_s18 = sld [smem:[#allocation6 + $0x1b]]  ;;  %v218_v9 = vmul.f32 %v217_v63, %v643_v3  ;;  %v45_v62 = vmul.f32 %v641_v2, %v641_v2 }
  0x58   :  { %s208_s28 = smul.f32 %s701_s13, %s701_s13  ;;  %v165_v45 = vmul.f32 %v164_v39, %v641_v2  ;;  %s751_s11 = sadd.f32 -1e-06, %s715_s6  ;;  %v146_v55 = vadd.f32 %v145_v47, %v141_v46  ;;  %v216_v16 = vadd.f32 %v215_v8, %v213_v7 }
  0x59   :  { %v167_v41 = vstv %s881_s25  ;;  %s210_s24 = smul.f32 %s707_s7, %s707_s7  ;;  %s762_s20 = sadd.f32 -1e-06, %s428_s3  ;;  %v46_v8 = vadd.f32 %v45_v62, %v44_v61 }
  0x5a   :  { %s209_s15 = sadd.f32 %s208_s28, %s207_s14  ;;  %s229_s2 = smul.f32 -2.0, %s726_s21  ;;  %v168_v48 = vmul.f32 %v167_v41, %v643_v3  ;;  %v166_v54 = vadd.f32 %v165_v45, %v163_v44  ;;  %v147_v1 = vmin.f32 %v122_v53, %v146_v55 }
  0x5b   :  { %s232_s17 = smul.f32 %s726_s21, %s726_s21  ;;  %s755_s22 = sadd.f32 -1e-06, %s426_s29 }
  0x5c   :  { %s746_s12 = sadd.f32 %s210_s24, %s209_s15  ;;  %v170_v56 = vadd.f32 %v169_v49, %v168_v48  ;;  %s230_s8 = smul.f32 -2.0, %s751_s11  ;;  %v237_v11 = vstv %s229_s2 }
  0x5d   :  { %s231_s30 = smul.f32 -2.0, %s755_s22  ;;  %s766_s9 = sld [smem:[#allocation6 + $0x1d]]  ;;  %v238_v18 = vmul.f32 %v237_v11, %v634_v0 }
  0x5e   :  { %s233_s27 = smul.f32 %s751_s11, %s751_s11  ;;  %s777_s6 = sadd.f32 -1e-06, %s430_s23  ;;  %v171_v4 = vadd.f32 %v170_v56, %v166_v54  ;;  %v219_v10 = vstv %s746_s12  ;;  %v239_v12 = vstv %s230_s8 }
  0x5f   :  { %s235_s16 = smul.f32 %s755_s22, %s755_s22  ;;  %s781_s14 = sadd.f32 -1e-06, %s432_s10  ;;  %v242_v13 = vstv %s231_s30  ;;  %v220_v17 = vadd.f32 %v219_v10, %v218_v9  ;;  %v240_v19 = vmul.f32 %v239_v12, %v641_v2  ;;  %v47_v9 = vmul.f32 %v643_v3, %v643_v3 }
  0x60   :  { %s234_s1 = sadd.f32 %s233_s27, %s232_s17  ;;  %s254_s13 = smul.f32 -2.0, %s762_s20  ;;  %v172_v14 = vmin.f32 %v147_v1, %v171_v4  ;;  %v243_v20 = vmul.f32 %v242_v13, %v643_v3 }
  0x61   :  { %s255_s7 = smul.f32 -2.0, %s777_s6  ;;  %s792_s26 = sadd.f32 -1e-06, %s753_s18  ;;  %v221_v26 = vadd.f32 %v220_v17, %v216_v16  ;;  %v241_v29 = vadd.f32 %v240_v19, %v238_v18 }
  0x62   :  { %s795_s0 = sadd.f32 %s235_s16, %s234_s1  ;;  %s256_s5 = smul.f32 -2.0, %s781_s14  ;;  %v262_v21 = vstv %s254_s13  ;;  %v197_v25 = vmin.f32 %v172_v14, %v196_v15  ;;  %v48_v14 = vadd.f32 %v47_v9, %v46_v8 }
  0x63   :  { %s257_s4 = smul.f32 %s762_s20, %s762_s20  ;;  %s803_s25 = sadd.f32 -1e-06, %s757_s19  ;;  %v264_v22 = vstv %s255_s7  ;;  %v263_v27 = vmul.f32 %v262_v21, %v634_v0 }
  0x64   :  { %s258_s28 = smul.f32 %s777_s6, %s777_s6  ;;  %s808_s29 = sadd.f32 -1e-06, %s766_s9  ;;  %v244_v23 = vstv %s795_s0  ;;  %v267_v24 = vstv %s256_s5  ;;  %v265_v28 = vmul.f32 %v264_v22, %v641_v2  ;;  %v222_v36 = vmin.f32 %v197_v25, %v221_v26 }
  0x65   :  { %s260_s21 = smul.f32 %s781_s14, %s781_s14  ;;  %s440_s24 = sld [smem:[#allocation6 + $0x1e]]  ;;  %v245_v30 = vadd.f32 %v244_v23, %v243_v20  ;;  %v268_v31 = vmul.f32 %v267_v24, %v643_v3 }
  0x66   :  { %s259_s3 = sadd.f32 %s258_s28, %s257_s4  ;;  %s279_s15 = smul.f32 -2.0, %s792_s26  ;;  %v266_v37 = vadd.f32 %v265_v28, %v263_v27 }
  0x67   :  { %s280_s2 = smul.f32 -2.0, %s803_s25  ;;  %s442_s17 = sld [smem:[#allocation6 + $0x1f]]  ;;  %v246_v38 = vadd.f32 %v245_v30, %v241_v29 }
  0x68   :  { %s261_s23 = sadd.f32 %s260_s21, %s259_s3  ;;  %s281_s12 = smul.f32 -2.0, %s808_s29  ;;  %v287_v33 = vstv %s279_s15 }
  0x69   :  { %s282_s10 = smul.f32 %s792_s26, %s792_s26  ;;  %s444_s11 = sld [smem:[#allocation6 + $0x20]]  ;;  %v289_v34 = vstv %s280_s2  ;;  %v288_v40 = vmul.f32 %v287_v33, %v634_v0  ;;  %v247_v46 = vmin.f32 %v222_v36, %v246_v38 }
  0x6a   :  { %s283_s18 = smul.f32 %s803_s25, %s803_s25  ;;  %s446_s22 = sld [smem:[#allocation6 + $0x21]]  ;;  %v269_v32 = vstv %s261_s23  ;;  %v292_v35 = vstv %s281_s12  ;;  %v290_v41 = vmul.f32 %v289_v34, %v641_v2 }
  0x6b   :  { %s285_s19 = smul.f32 %s808_s29, %s808_s29  ;;  %s441_s8 = sadd.f32 -1e-06, %s440_s24  ;;  %v270_v39 = vadd.f32 %v269_v32, %v268_v31  ;;  %v293_v42 = vmul.f32 %v292_v35, %v643_v3 }
  0x6c   :  { %s284_s20 = sadd.f32 %s283_s18, %s282_s10  ;;  %s828_s30 = sld [smem:[#allocation6 + $0x22]]  ;;  %v291_v48 = vadd.f32 %v290_v41, %v288_v40 }
  0x6d   :  { %s443_s9 = sadd.f32 -1e-06, %s442_s17  ;;  %s304_s27 = smul.f32 -2.0, %s441_s8  ;;  %v271_v47 = vadd.f32 %v270_v39, %v266_v37 }
  0x6e   :  { %s286_s6 = sadd.f32 %s285_s19, %s284_s20  ;;  %s307_s16 = smul.f32 %s441_s8, %s441_s8 }
  0x6f   :  { %s445_s14 = sadd.f32 -1e-06, %s444_s11  ;;  %s305_s1 = smul.f32 -2.0, %s443_s9  ;;  %v312_v44 = vstv %s304_s27  ;;  %v272_v54 = vmin.f32 %v247_v46, %v271_v47 }
  0x70   :  { %v294_v43 = vstv %s286_s6  ;;  %s308_s13 = smul.f32 %s443_s9, %s443_s9  ;;  %s833_s7 = sadd.f32 -1e-06, %s446_s22  ;;  %v313_v50 = vmul.f32 %v312_v44, %v634_v0 }
  0x71   :  { %s306_s26 = smul.f32 -2.0, %s445_s14  ;;  %v314_v45 = vstv %s305_s1  ;;  %s450_s0 = sld [smem:[#allocation6 + $0x23]]  ;;  %v295_v49 = vadd.f32 %v294_v43, %v293_v42 }
  0x72   :  { %s309_s5 = sadd.f32 %s308_s13, %s307_s16  ;;  %s310_s4 = smul.f32 %s445_s14, %s445_s14  ;;  %v315_v51 = vmul.f32 %v314_v45, %v641_v2 }
  0x73   :  { %v317_v52 = vstv %s306_s26  ;;  %s449_s25 = sadd.f32 -1e-06, %s828_s30  ;;  %s329_s28 = smul.f32 -2.0, %s833_s7  ;;  %v296_v57 = vadd.f32 %v295_v49, %v291_v48 }
  0x74   :  { %s311_s29 = sadd.f32 %s310_s4, %s309_s5  ;;  %v318_v53 = vmul.f32 %v317_v52, %v643_v3  ;;  %s332_s21 = smul.f32 %s833_s7, %s833_s7  ;;  %v316_v58 = vadd.f32 %v315_v51, %v313_v50 }
  0x75   :  { %s330_s24 = smul.f32 -2.0, %s449_s25  ;;  %v337_v56 = vstv %s329_s28  ;;  %v297_v4 = vmin.f32 %v272_v54, %v296_v57  ;;  %s525_s10 = smov [#allocation7]  }
  0x76   :  { %v319_v55 = vstv %s311_s29  ;;  %s333_s3 = smul.f32 %s449_s25, %s449_s25  ;;  %v338_v63 = vmul.f32 %v337_v56, %v634_v0  ;;  %s371_s11 = sshll.u32 %s525_s10, 4  ;;  %s372_s11 = int_to_ptr.vmem [resolvable:$true] %s371_s11 }
  0x77   :  { %v320_v59 = vadd.f32 %v319_v55, %v318_v53  ;;  %s451_s15 = sadd.f32 -1e-06, %s450_s0  ;;  %v339_v60 = vstv %s330_s24  ;;  %s493_s18 = scalar_lea.vmem %s372_s11, 16 }
  0x78   :  { %s334_s2 = sadd.f32 %s333_s3, %s332_s21  ;;  %v340_v1 = vmul.f32 %v339_v60, %v641_v2  ;;  %p494_p13 = scmp.ne.s32.totalorder %s372_s11, %s493_s18 }
  0x79   :  { %s331_s17 = smul.f32 -2.0, %s451_s15  ;;  %v321_v5 = vadd.f32 %v320_v59, %v316_v58  ;;  %s497_s22 = scalar_lea.vmem %s372_s11, 32 }
  0x7a   :  { %s335_s23 = smul.f32 %s451_s15, %s451_s15  ;;  %v341_v10 = vadd.f32 %v340_v1, %v338_v63  ;;  %p498_p0 = scmp.lt.s32.totalorder %s372_s11, %s372_s11 }
  0x7b   :  { %v342_v6 = vstv %s331_s17  ;;  %v322_v12 = vmin.f32 %v297_v4, %v321_v5  ;;  %p499_p1 = scmp.lt.s32.totalorder %s497_s22, %s493_s18 }
  0x7c   :  { %s336_s12 = sadd.f32 %s335_s23, %s334_s2  ;;  %v343_v7 = vmul.f32 %v342_v6, %v643_v3 }
  0x7d   :  { %p500_p2 = por %p499_p1, %p498_p0 }
  0x7e   :  { %v344_v11 = vstv %s336_s12 }
  0x7f   :  { %v345_v13 = vadd.f32 %v344_v11, %v343_v7  ;;  %p501_p3 = pnand %p500_p2, %p494_p13 }
  0x81   :  { %v346_v15 = vadd.f32 %v345_v13, %v341_v10 }
  0x83   :  { %v347_v0 = vmin.f32 %v322_v12, %v346_v15 }
  0x85   :  { %v348_v16 = vadd.f32 %v347_v0, %v48_v14 }
  0x87   :  { %v349_v2 = vmax.f32 %v348_v16, 0.0 }
  0x89   :  { %v350_v17 = vadd.f32 1e-06, %v349_v2 }
  0x8b   :  { %457 = vrsqrt.f32 %v350_v17  ;;  %vm353_vm0 = vcmp.eq.f32.partialorder %v350_v17, inf  ;;  %v356_v19 = vand.u32 2147483648, %v350_v17  ;;  %vm355_vm1 = vcmp.eq.f32.partialorder %v350_v17, 0.0 }
  0x95   :  { %v458_v18 = vpop.eup %457 }
  0x96   :  { %v352_v20 = vmul.f32 %v458_v18, %v350_v17 }
  0x98   :  { %v354_v21 = vsel %vm353_vm0, %v350_v17, %v352_v20 }
  0x99   :  { %v357_v22 = vsel %vm355_vm1, %v356_v19, %v354_v21 }
  0x9a   :  { %v358_v23 = vrot.slane %v357_v22, 4 }
  0x9c   :  { %v359_v3 = vadd.f32 %v358_v23, %v357_v22 }
  0x9e   :  { %v360_v24 = vrot.slane %v359_v3, 2 }
  0xa0   :  { %v361_v25 = vadd.f32 %v360_v24, %v359_v3 }
  0xa2   :  { %v362_v26 = vrot.slane %v361_v25, 1 }
  0xa4   :  { %v363_v27 = vadd.f32 %v362_v26, %v361_v25 }
  0xa6   :  { %364 = vst [vmem:[#allocation7] sm:$0x1] %v363_v27 }
  0xa7   :  { %504 = shalt.err (!%p501_p3)
}
  0xa8   :  { %s882_s20 = sld [smem:[#allocation11_spill]] }
  0xae   :  { %s505_s30 = scalar_lea.hbm %s882_s20, 16 }
  0xaf   :  { %p506_p4 = scmp.ne.s32.totalorder %s882_s20, %s505_s30  ;;  %p509_p5 = scmp.lt.u32.totalorder %s505_s30, %s882_s20 }
  0xb1   :  { %p511_p6 = pnand %p509_p5, %p506_p4 }
  0xb3   :  { %514 = shalt.err (!%p511_p6)
}
  0xb4   :  { %374 = dma.vmem_to_hbm [thread:$0]  %s372_s11, 16, %s882_s20, [#allocation4]  }
  0xb5   :  { %519 = dma.done.wait [#allocation4], 16  }
  0xb6   :  { %520 = vsyncadd [#allocation4], 4294967280 }
  0xb7   :  { %378 = vsyncpa [#allocation3], 1 }
  0xb8   :  { %379 = vsyncpa [#allocation4], 1 }
  0xb9   :  { %380 = vsyncpa [#allocation5], 1 }

</bundles_post_ra>
